<compile_context>
chip_gen: v7x
topology: tpu7x:2x2x1
jax: 0.10.0
libtpu: 0.0.40
codegen_flags: <defaults>
</compile_context>

<pallas_src>
import math

import jax
import jax.numpy as jnp
from jax.experimental import pallas as pl
from jax.experimental.pallas import tpu as pltpu


HIDDEN = 200


def _round_up(x, m):
    return ((x + m - 1) // m) * m


def _policy_kernel(x_ref, w1_ref, b1_ref, w2_ref, b2_ref, w3_ref, b3_ref, o_ref):
    wdt = w1_ref.dtype  # bf16 (or f32) MXU operand dtype
    # fc1 + relu   (bf16 operands, f32 accumulate)
    x = x_ref[...].astype(wdt)
    h1 = jnp.dot(x, w1_ref[...], preferred_element_type=jnp.float32)
    h1 = jnp.maximum(h1 + b1_ref[...], 0.0)
    # fc2 + relu
    h2 = jnp.dot(h1.astype(wdt), w2_ref[...], preferred_element_type=jnp.float32)
    h2 = jnp.maximum(h2 + b2_ref[...], 0.0)
    # fc3 (no activation); output block is lane-dense (128-wide padded)
    out = jnp.dot(h2.astype(wdt), w3_ref[...], preferred_element_type=jnp.float32)
    o_ref[...] = (out + b3_ref[...]).astype(o_ref.dtype)


def prepare_params(params, *, use_bf16=True):
    """Zero-pad hidden dim to 256 and output dim to a multiple of 128; cast weights."""
    hidden_pad = _round_up(HIDDEN, 128)            # 256
    dim_out = params["w3"].shape[1]
    out_pad = _round_up(dim_out, 128)              # >= 128

    wdt = jnp.bfloat16 if use_bf16 else jnp.float32

    def pad2(a, rows, cols):
        return jnp.pad(a, ((0, rows - a.shape[0]), (0, cols - a.shape[1])))

    return {
        "w1": pad2(params["w1"], params["w1"].shape[0], hidden_pad).astype(wdt),
        "b1": pad2(params["b1"], 1, hidden_pad).astype(jnp.float32),
        "w2": pad2(params["w2"], hidden_pad, hidden_pad).astype(wdt),
        "b2": pad2(params["b2"], 1, hidden_pad).astype(jnp.float32),
        "w3": pad2(params["w3"], hidden_pad, out_pad).astype(wdt),
        "b3": pad2(params["b3"], 1, out_pad).astype(jnp.float32),
        "dim_out": dim_out,
    }


def policy_forward(x, prepped, *, tb=512):
    """Fused MLP forward.

    x: [batch, dim_in] float32
    prepped: output of prepare_params()
    tb: batch tile (rows per grid step); multiple of 8, kept <= 2048 so the
        (tb, 256) f32 intermediates stay small even on v7x's 64 MiB VMEM.
    """
    batch, dim_in = x.shape
    dim_out = prepped["dim_out"]
    hidden_pad = prepped["w1"].shape[1]
    out_pad = prepped["w3"].shape[1]

    # Pick an effective batch tile: multiple of 8 sublanes, capped by batch.
    tb = max(8, min(tb, 2048))
    tb = min(_round_up(tb, 8), _round_up(batch, 8))
    batch_pad = _round_up(batch, tb)
    if batch_pad != batch:
        x = jnp.pad(x, ((0, batch_pad - batch), (0, 0)))

    grid = (batch_pad // tb,)

    def resident(shape):
        # Weight/bias blocks: same block every grid step -> stays VMEM-resident.
        return pl.BlockSpec(shape, lambda i: (0, 0))

    out_padded = pl.pallas_call(
        _policy_kernel,
        out_shape=jax.ShapeDtypeStruct((batch_pad, out_pad), jnp.float32),
        grid=grid,
        in_specs=[
            pl.BlockSpec((tb, dim_in), lambda i: (i, 0)),   # x tile (pipelined)
            resident((dim_in, hidden_pad)),                 # w1
            resident((1, hidden_pad)),                      # b1
            resident((hidden_pad, hidden_pad)),             # w2
            resident((1, hidden_pad)),                      # b2
            resident((hidden_pad, out_pad)),                # w3
            resident((1, out_pad)),                         # b3
        ],
        out_specs=pl.BlockSpec((tb, out_pad), lambda i: (i, 0)),
        compiler_params=pltpu.CompilerParams(
            dimension_semantics=("parallel",),
        ),
    )(x, prepped["w1"], prepped["b1"], prepped["w2"], prepped["b2"],
      prepped["w3"], prepped["b3"])

    return out_padded[:batch, :dim_out]


def init_policy_params(key, dim_in, dim_out, hidden=HIDDEN):
    """Deterministic init mirroring PyTorch nn.Linear default (U(-1/sqrt(fan_in), 1/sqrt(fan_in)))."""
    keys = jax.random.split(key, 6)

    def linear(kw, kb, fan_in, fan_out):
        bound = 1.0 / math.sqrt(fan_in)
        # stored as [in, out] (transpose of PyTorch's [out, in]) for x @ W
        w = jax.random.uniform(kw, (fan_in, fan_out), jnp.float32, -bound, bound)
        b = jax.random.uniform(kb, (1, fan_out), jnp.float32, -bound, bound)
        return w, b

    w1, b1 = linear(keys[0], keys[1], dim_in, hidden)
    w2, b2 = linear(keys[2], keys[3], hidden, hidden)
    w3, b3 = linear(keys[4], keys[5], hidden, dim_out)
    return {"w1": w1, "b1": b1, "w2": w2, "b2": b2, "w3": w3, "b3": b3}


def policy_ref_f32(x, p):
    """Pure-JAX f32 reference (exact PyTorch-forward semantics)."""
    h1 = jnp.maximum(x @ p["w1"] + p["b1"], 0.0)
    h2 = jnp.maximum(h1 @ p["w2"] + p["b2"], 0.0)
    return h2 @ p["w3"] + p["b3"]


def policy_ref_prepped(x, pp):
    """Pure-JAX reference mirroring the kernel's bf16-operand / f32-accumulate path."""
    wdt = pp["w1"].dtype
    h1 = jnp.maximum(
        jnp.dot(x.astype(wdt), pp["w1"], preferred_element_type=jnp.float32) + pp["b1"], 0.0)
    h2 = jnp.maximum(
        jnp.dot(h1.astype(wdt), pp["w2"], preferred_element_type=jnp.float32) + pp["b2"], 0.0)
    out = jnp.dot(h2.astype(wdt), pp["w3"], preferred_element_type=jnp.float32) + pp["b3"]
    return out[:, :pp["dim_out"]]


if __name__ == "__main__":
    # BipedalWalker-v3: observation dim 24, action dim 4.
    batch, dim_in, dim_out = 8, 24, 4

    key = jax.random.PRNGKey(0)
    k_params, k_x = jax.random.split(key)

    params = init_policy_params(k_params, dim_in, dim_out)
    prepped = prepare_params(params, use_bf16=True)
    x = jax.random.normal(k_x, (batch, dim_in), jnp.float32)

    out = policy_forward(x, prepped)
    out = jax.block_until_ready(out)
    assert out.shape == (batch, dim_out), out.shape

    # Tight check vs. a reference that matches the kernel's numerics exactly.
    ref_matched = policy_ref_prepped(x, prepped)
    assert jnp.allclose(out, ref_matched, atol=1e-4, rtol=1e-4), "mismatch vs matched reference"

    # Loose sanity check vs. the full-f32 PyTorch-equivalent forward.
    ref_f32 = policy_ref_f32(x, params)
    assert jnp.allclose(out, ref_f32, atol=1e-1, rtol=1e-1), "mismatch vs f32 reference"

    print("KERNEL_OK")
</pallas_src>

<mosaic_0001>
module attributes {stable_mosaic.version = 11 : i64} {
  func.func @_policy_kernel(%arg0: i32, %arg1: memref<8x24xf32, #tpu.memory_space<vmem>>, %arg2: memref<24x256xbf16, #tpu.memory_space<vmem>>, %arg3: memref<1x256xf32, #tpu.memory_space<vmem>>, %arg4: memref<256x256xbf16, #tpu.memory_space<vmem>>, %arg5: memref<1x256xf32, #tpu.memory_space<vmem>>, %arg6: memref<256x128xbf16, #tpu.memory_space<vmem>>, %arg7: memref<1x128xf32, #tpu.memory_space<vmem>>, %arg8: memref<8x128xf32, #tpu.memory_space<vmem>>) attributes {dimension_semantics = [#tpu.dimension_semantics<parallel>], iteration_bounds = array<i64: 1>, scalar_prefetch = 0 : i64, scratch_operands = 0 : i64, tpu.core_type = #tpu.core_type<tc>, window_params = [{transform_indices = @transform_0, window_bounds = array<i64: 8, 24>}, {pipeline_mode = #tpu.pipeline_mode<synchronous>, transform_indices = @transform_1, window_bounds = array<i64: 24, 256>}, {pipeline_mode = #tpu.pipeline_mode<synchronous>, transform_indices = @transform_2, window_bounds = array<i64: 1, 256>}, {pipeline_mode = #tpu.pipeline_mode<synchronous>, transform_indices = @transform_3, window_bounds = array<i64: 256, 256>}, {pipeline_mode = #tpu.pipeline_mode<synchronous>, transform_indices = @transform_4, window_bounds = array<i64: 1, 256>}, {pipeline_mode = #tpu.pipeline_mode<synchronous>, transform_indices = @transform_5, window_bounds = array<i64: 256, 128>}, {pipeline_mode = #tpu.pipeline_mode<synchronous>, transform_indices = @transform_6, window_bounds = array<i64: 1, 128>}, {transform_indices = @transform_7, window_bounds = array<i64: 8, 128>}]} {
    %c0 = arith.constant 0 : index
    %c0_0 = arith.constant 0 : index
    %0 = vector.load %arg1[%c0, %c0_0] : memref<8x24xf32, #tpu.memory_space<vmem>>, vector<8x24xf32>
    %1 = arith.truncf %0 : vector<8x24xf32> to vector<8x24xbf16>
    %c0_1 = arith.constant 0 : index
    %c0_2 = arith.constant 0 : index
    %2 = vector.load %arg2[%c0_1, %c0_2] : memref<24x256xbf16, #tpu.memory_space<vmem>>, vector<24x256xbf16>
    %cst = arith.constant dense<0.000000e+00> : vector<8x256xf32>
    %3 = tpu.matmul %1, %2, %cst {dimension_numbers = #tpu.dot_dimension_numbers<[1], [0], [0], [1], [0, 0, 1, 1], [], []>} : vector<8x24xbf16>, vector<24x256xbf16>, vector<8x256xf32> -> vector<8x256xf32>
    %c0_3 = arith.constant 0 : index
    %c0_4 = arith.constant 0 : index
    %4 = vector.load %arg3[%c0_3, %c0_4] : memref<1x256xf32, #tpu.memory_space<vmem>>, vector<1x256xf32>
    %5 = vector.broadcast %4 : vector<1x256xf32> to vector<8x256xf32>
    %6 = arith.addf %3, %5 : vector<8x256xf32>
    %cst_5 = arith.constant 0.000000e+00 : f32
    %7 = vector.broadcast %cst_5 : f32 to vector<8x256xf32>
    %8 = arith.maximumf %6, %7 : vector<8x256xf32>
    %9 = arith.truncf %8 : vector<8x256xf32> to vector<8x256xbf16>
    %c0_6 = arith.constant 0 : index
    %c0_7 = arith.constant 0 : index
    %10 = vector.load %arg4[%c0_6, %c0_7] : memref<256x256xbf16, #tpu.memory_space<vmem>>, vector<256x256xbf16>
    %cst_8 = arith.constant dense<0.000000e+00> : vector<8x256xf32>
    %11 = tpu.matmul %9, %10, %cst_8 {dimension_numbers = #tpu.dot_dimension_numbers<[1], [0], [0], [1], [0, 0, 1, 1], [], []>} : vector<8x256xbf16>, vector<256x256xbf16>, vector<8x256xf32> -> vector<8x256xf32>
    %c0_9 = arith.constant 0 : index
    %c0_10 = arith.constant 0 : index
    %12 = vector.load %arg5[%c0_9, %c0_10] : memref<1x256xf32, #tpu.memory_space<vmem>>, vector<1x256xf32>
    %13 = vector.broadcast %12 : vector<1x256xf32> to vector<8x256xf32>
    %14 = arith.addf %11, %13 : vector<8x256xf32>
    %cst_11 = arith.constant 0.000000e+00 : f32
    %15 = vector.broadcast %cst_11 : f32 to vector<8x256xf32>
    %16 = arith.maximumf %14, %15 : vector<8x256xf32>
    %17 = arith.truncf %16 : vector<8x256xf32> to vector<8x256xbf16>
    %c0_12 = arith.constant 0 : index
    %c0_13 = arith.constant 0 : index
    %18 = vector.load %arg6[%c0_12, %c0_13] : memref<256x128xbf16, #tpu.memory_space<vmem>>, vector<256x128xbf16>
    %cst_14 = arith.constant dense<0.000000e+00> : vector<8x128xf32>
    %19 = tpu.matmul %17, %18, %cst_14 {dimension_numbers = #tpu.dot_dimension_numbers<[1], [0], [0], [1], [0, 0, 1, 1], [], []>} : vector<8x256xbf16>, vector<256x128xbf16>, vector<8x128xf32> -> vector<8x128xf32>
    %c0_15 = arith.constant 0 : index
    %c0_16 = arith.constant 0 : index
    %20 = vector.load %arg7[%c0_15, %c0_16] : memref<1x128xf32, #tpu.memory_space<vmem>>, vector<1x128xf32>
    %21 = vector.broadcast %20 : vector<1x128xf32> to vector<8x128xf32>
    %22 = arith.addf %19, %21 : vector<8x128xf32>
    %c0_17 = arith.constant 0 : index
    %c0_18 = arith.constant 0 : index
    %23 = vector.load %arg8[%c0_17, %c0_18] : memref<8x128xf32, #tpu.memory_space<vmem>>, vector<8x128xf32>
    tpu.vector_store %arg8[%c0_17, %c0_18], %22 {strides = array<i32>} : memref<8x128xf32, #tpu.memory_space<vmem>>, vector<8x128xf32>,
    return
  }
  func.func @transform_0(%arg0: i32) -> (i32, i32) {
    %c0_i32 = arith.constant 0 : i32
    %c0_i32_0 = arith.constant 0 : i32
    return %arg0, %c0_i32 : i32, i32
  }
  func.func @transform_1(%arg0: i32) -> (i32, i32) {
    %c0_i32 = arith.constant 0 : i32
    %c0_i32_0 = arith.constant 0 : i32
    %c0_i32_1 = arith.constant 0 : i32
    return %c0_i32, %c0_i32_0 : i32, i32
  }
  func.func @transform_2(%arg0: i32) -> (i32, i32) {
    %c0_i32 = arith.constant 0 : i32
    %c0_i32_0 = arith.constant 0 : i32
    %c0_i32_1 = arith.constant 0 : i32
    return %c0_i32, %c0_i32_0 : i32, i32
  }
  func.func @transform_3(%arg0: i32) -> (i32, i32) {
    %c0_i32 = arith.constant 0 : i32
    %c0_i32_0 = arith.constant 0 : i32
    %c0_i32_1 = arith.constant 0 : i32
    return %c0_i32, %c0_i32_0 : i32, i32
  }
  func.func @transform_4(%arg0: i32) -> (i32, i32) {
    %c0_i32 = arith.constant 0 : i32
    %c0_i32_0 = arith.constant 0 : i32
    %c0_i32_1 = arith.constant 0 : i32
    return %c0_i32, %c0_i32_0 : i32, i32
  }
  func.func @transform_5(%arg0: i32) -> (i32, i32) {
    %c0_i32 = arith.constant 0 : i32
    %c0_i32_0 = arith.constant 0 : i32
    %c0_i32_1 = arith.constant 0 : i32
    return %c0_i32, %c0_i32_0 : i32, i32
  }
  func.func @transform_6(%arg0: i32) -> (i32, i32) {
    %c0_i32 = arith.constant 0 : i32
    %c0_i32_0 = arith.constant 0 : i32
    %c0_i32_1 = arith.constant 0 : i32
    return %c0_i32, %c0_i32_0 : i32, i32
  }
  func.func @transform_7(%arg0: i32) -> (i32, i32) {
    %c0_i32 = arith.constant 0 : i32
    %c0_i32_0 = arith.constant 0 : i32
    return %arg0, %c0_i32 : i32, i32
  }
}

</mosaic_0001>

<bundles_post_ra>
// kernel: tpu_custom_call.1
= control target key start
LH: loop header
LB: loop body
LE: loop exit
PB: predicated region body
PF: predicated region fallthrough
CT: control target
= control target key end

     0   :  { %12 = vsyncpa [#allocation3], 0  ;;  %s1010_s0 = inlined_call_operand.hbm [shape: f32[8,24], index: 0, kind: input, shape index: {}]   ;;  %s1011_s1 = inlined_call_operand.hbm [shape: bf16[24,256], index: 1, kind: input, shape index: {}]   ;;  %s1012_s2 = inlined_call_operand.vmem [shape: f32[1,256], index: 2, kind: input, shape index: {}]   ;;  %s1013_s3 = inlined_call_operand.hbm [shape: bf16[256,256], index: 3, kind: input, shape index: {}]   ;;  %s1014_s4 = inlined_call_operand.vmem [shape: f32[1,256], index: 4, kind: input, shape index: {}]   ;;  %s1015_s5 = inlined_call_operand.hbm [shape: bf16[256,128], index: 5, kind: input, shape index: {}]   ;;  %s1016_s6 = inlined_call_operand.vmem [shape: f32[1,128], index: 6, kind: input, shape index: {}]   ;;  %s1017_s7 = inlined_call_operand.hbm [shape: f32[8,128], index: 7, kind: output, shape index: {}]  }
   0x1   :  { %13 = vsyncpa [#allocation6], 0 }
   0x2   :  { %14 = vsyncpa [#allocation9], 0 }
   0x3   :  { %15 = vsyncpa [#allocation4], 0  ;;  %s885_s24 = smov [#allocation5]   ;;  %s767_s28 = scalar_lea.hbm %s1011_s1, 384 }
   0x4   :  { %s31_s25 = sshll.u32 %s885_s24, 4  ;;  %p768_p0 = scmp.ne.s32.totalorder %s1011_s1, %s767_s28  ;;  %s32_s25 = int_to_ptr.vmem [resolvable:$true] %s31_s25 }
   0x5   :  { %p771_p1 = scmp.lt.u32.totalorder %s767_s28, %s1011_s1 }
   0x7   :  { %p773_p2 = pnand %p771_p1, %p768_p0 }
   0x9   :  { %776 = shalt.err (!%p773_p2)
}
   0xa   :  { %s777_s10 = scalar_lea.vmem %s32_s25, 384  ;;  %p782_p4 = scmp.lt.s32.totalorder %s32_s25, %s32_s25 }
   0xb   :  { %p778_p3 = scmp.ne.s32.totalorder %s32_s25, %s777_s10  ;;  %p783_p5 = scmp.lt.s32.totalorder %s777_s10, %s777_s10 }
   0xd   :  { %p784_p6 = por %p783_p5, %p782_p4 }
   0xf   :  { %p785_p7 = pnand %p784_p6, %p778_p3 }
  0x11   :  { %788 = shalt.err (!%p785_p7)
}
  0x12   :  { %s886_s11 = smov 128   ;;  %s887_s12 = smov 8  }
  0x13   :  { %37 = dma.hbm_to_vmem [thread:$0]  %s1011_s1, 384, %s32_s25, [#allocation6], %s886_s11, %s886_s11, %s887_s12  }
  0x14   :  { %s888_s15 = smov [#allocation2]   ;;  %s889_s17 = smov [#allocation7]  }
  0x15   :  { %s22_s16 = sshll.u32 %s888_s15, 4  ;;  %s45_s18 = sshll.u32 %s889_s17, 4  ;;  %s23_s16 = int_to_ptr.vmem [resolvable:$true] %s22_s16  ;;  %s46_s18 = int_to_ptr.vmem [resolvable:$true] %s45_s18 }
  0x16   :  { %s789_s21 = scalar_lea.hbm %s1010_s0, 128 }
  0x17   :  { %p790_p8 = scmp.ne.s32.totalorder %s1010_s0, %s789_s21  ;;  %p793_p9 = scmp.lt.u32.totalorder %s789_s21, %s1010_s0 }
  0x19   :  { %p795_p10 = pnand %p793_p9, %p790_p8 }
  0x1b   :  { %798 = shalt.err (!%p795_p10)
}
  0x1c   :  { %s799_s1 = scalar_lea.vmem %s23_s16, 128  ;;  %p804_p12 = scmp.lt.s32.totalorder %s23_s16, %s23_s16 }
  0x1d   :  { %p800_p11 = scmp.ne.s32.totalorder %s23_s16, %s799_s1  ;;  %p805_p13 = scmp.lt.s32.totalorder %s799_s1, %s799_s1 }
  0x1f   :  { %p806_p0 = por %p805_p13, %p804_p12 }
  0x21   :  { %p807_p1 = pnand %p806_p0, %p800_p11 }
  0x23   :  { %810 = shalt.err (!%p807_p1)
}
  0x24   :  { %25 = dma.hbm_to_vmem [thread:$0]  %s1010_s0, 128, %s23_s16, [#allocation3]  }
  0x25   :  { %s811_s30 = scalar_lea.hbm %s1013_s3, 4096 }
  0x26   :  { %p812_p2 = scmp.ne.s32.totalorder %s1013_s3, %s811_s30  ;;  %p815_p3 = scmp.lt.u32.totalorder %s811_s30, %s1013_s3 }
  0x28   :  { %p817_p4 = pnand %p815_p3, %p812_p2 }
  0x2a   :  { %820 = shalt.err (!%p817_p4)
}
  0x2b   :  { %s821_s14 = scalar_lea.vmem %s46_s18, 4096  ;;  %p826_p6 = scmp.lt.s32.totalorder %s46_s18, %s46_s18 }
  0x2c   :  { %p822_p5 = scmp.ne.s32.totalorder %s46_s18, %s821_s14  ;;  %p827_p7 = scmp.lt.s32.totalorder %s821_s14, %s821_s14 }
  0x2e   :  { %p828_p8 = por %p827_p7, %p826_p6 }
  0x30   :  { %p829_p9 = pnand %p828_p8, %p822_p5 }
  0x32   :  { %832 = shalt.err (!%p829_p9)
}
  0x33   :  { %51 = dma.hbm_to_vmem [thread:$0]  %s1013_s3, 4096, %s46_s18, [#allocation6], %s886_s11, %s886_s11, %s887_s12  }
  0x34   :  { %s890_s16 = smov [#allocation8]   ;;  %s833_s21 = scalar_lea.hbm %s1015_s5, 2048 }
  0x35   :  { %s59_s17 = sshll.u32 %s890_s16, 4  ;;  %p834_p10 = scmp.ne.s32.totalorder %s1015_s5, %s833_s21  ;;  %s60_s17 = int_to_ptr.vmem [resolvable:$true] %s59_s17 }
  0x36   :  { %p837_p11 = scmp.lt.u32.totalorder %s833_s21, %s1015_s5 }
  0x38   :  { %p839_p12 = pnand %p837_p11, %p834_p10 }
  0x3a   :  { %842 = shalt.err (!%p839_p12)
}
  0x3b   :  { %s843_s1 = scalar_lea.vmem %s60_s17, 2048  ;;  %p848_p0 = scmp.lt.s32.totalorder %s60_s17, %s60_s17 }
  0x3c   :  { %p844_p13 = scmp.ne.s32.totalorder %s60_s17, %s843_s1  ;;  %p849_p1 = scmp.lt.s32.totalorder %s843_s1, %s843_s1 }
  0x3e   :  { %p850_p2 = por %p849_p1, %p848_p0 }
  0x40   :  { %p851_p3 = pnand %p850_p2, %p844_p13 }
  0x42   :  { %854 = shalt.err (!%p851_p3)
}
  0x43   :  { %s891_s3 = smov 64   ;;  %s892_s11 = smov 4  }
  0x44   :  { %65 = dma.hbm_to_vmem [thread:$0]  %s1015_s5, 2048, %s60_s17, [#allocation9], %s891_s3, %s891_s3, %s892_s11  }
  0x45   :  { %877 = dma.done.wait [#allocation3], 128  }
  0x46   :  { %878 = vsyncadd [#allocation3], 4294967168 }
  0x47   :  { %879 = dma.done.wait [#allocation6], 4480  }
  0x48   :  { %880 = vsyncadd [#allocation6], 4294962816 }
  0x49   :  { %881 = dma.done.wait [#allocation9], 2048  }
  0x4a   :  { %882 = vsyncadd [#allocation9], 4294965248  ;;  %v893_v0 = vmov 0   ;;  %v698_v1 = vld [vmem:[#allocation5 + $0x4] ss:$8 sps:$4 sm:$0xff]   ;;  %v85_v3 = vld [vmem:[#allocation5 + $0x10] sm:$0xff]  ;;  %v88_v53 = vlaneseq }
  0x4b   :  { %156 = vmatprep.mubr.bf16.mxu0 %v893_v0  ;;  %v700_v2 = vld [vmem:[#allocation5] ss:$8 sps:$4 sm:$0xff]   ;;  %vm117_vm0 = vcmask 1043456   ;;  %v81_v4 = vld [vmem:[#allocation2] sm:$0xff]  ;;  %124 = vmatprep.subr.bf16.mxu0 %v698_v1  ;;  %v614_v5 = vcombine.high %v85_v3, %v85_v3  ;;  %v613_v6 = vcombine.low %v85_v3, %v85_v3  ;;  %v706_v10 = vld [vmem:[#allocation7 + $0x14] ss:$8 sps:$4 sm:$0xff]  }
  0x4c   :  { %v703_v7 = vld [vmem:[#allocation7 + $0x4] ss:$8 sps:$4 sm:$0xff]   ;;  %125 = vmatpush1.bf16.msra.mxu0 %v700_v2  ;;  %v705_v8 = vld [vmem:[#allocation7] ss:$8 sps:$4 sm:$0xff]   ;;  %v708_v11 = vld [vmem:[#allocation7 + $0x10] ss:$8 sps:$4 sm:$0xff]   ;;  %v82_v12 = vpack.c.bf16 %v81_v4, %v81_v4 }
  0x4d   :  { %615 = vmatprep.subr.msk.bf16.mxu0 %vm117_vm0, %v614_v5  ;;  %v119_v9 = vsel %vm117_vm0, %v613_v6, 0  ;;  %373 = vmatprep.subr.bf16.mxu1 %v703_v7  ;;  %v709_v13 = vld [vmem:[#allocation7 + $0x24] ss:$8 sps:$4 sm:$0xff]   ;;  %vm113_vm1 = vcmask 195584   ;;  %v711_v14 = vld [vmem:[#allocation7 + $0x20] ss:$8 sps:$4 sm:$0xff]  }
  0x4e   :  { %374 = vmatpush1.bf16.msra.mxu1 %v705_v8  ;;  %v712_v15 = vld [vmem:[#allocation7 + $0x34] ss:$8 sps:$4 sm:$0xff]   ;;  %v714_v16 = vld [vmem:[#allocation7 + $0x30] ss:$8 sps:$4 sm:$0xff]   ;;  %v715_v17 = vld [vmem:[#allocation7 + $0x44] ss:$8 sps:$4 sm:$0xff]  }
  0x4f   :  { %375 = vmatprep.subr.bf16.mxu1 %v706_v10  ;;  %v717_v18 = vld [vmem:[#allocation7 + $0x40] ss:$8 sps:$4 sm:$0xff]   ;;  %v718_v19 = vld [vmem:[#allocation7 + $0x54] ss:$8 sps:$4 sm:$0xff]   ;;  %v720_v20 = vld [vmem:[#allocation7 + $0x50] ss:$8 sps:$4 sm:$0xff]  }
  0x50   :  { %127 = vmatpush1.bf16.msra.mxu0 %v119_v9  ;;  %v721_v21 = vld [vmem:[#allocation7 + $0x64] ss:$8 sps:$4 sm:$0xff]   ;;  %v723_v22 = vld [vmem:[#allocation7 + $0x60] ss:$8 sps:$4 sm:$0xff]   ;;  %v724_v23 = vld [vmem:[#allocation7 + $0x74] ss:$8 sps:$4 sm:$0xff]  }
  0x51   :  { %v726_v24 = vld [vmem:[#allocation7 + $0x70] ss:$8 sps:$4 sm:$0xff]   ;;  %v727_v25 = vld [vmem:[#allocation7 + $0x84] ss:$8 sps:$4 sm:$0xff]   ;;  %v729_v26 = vld [vmem:[#allocation7 + $0x80] ss:$8 sps:$4 sm:$0xff]  }
  0x52   :  { %376 = vmatpush1.bf16.msra.mxu1 %v708_v11  ;;  %v730_v27 = vld [vmem:[#allocation7 + $0x94] ss:$8 sps:$4 sm:$0xff]   ;;  %v732_v28 = vld [vmem:[#allocation7 + $0x90] ss:$8 sps:$4 sm:$0xff]   ;;  %v733_v29 = vld [vmem:[#allocation7 + $0xa4] ss:$8 sps:$4 sm:$0xff]  }
  0x53   :  { %616 = vmatmul.mubr.msk.bf16.vlgmr.msra.gmra.mrb[0].mxu0 %vm113_vm1, %v82_v12  ;;  %377 = vmatprep.subr.bf16.mxu1 %v709_v13  ;;  %v735_v30 = vld [vmem:[#allocation7 + $0xa0] ss:$8 sps:$4 sm:$0xff]   ;;  %v736_v31 = vld [vmem:[#allocation7 + $0xb4] ss:$8 sps:$4 sm:$0xff]   ;;  %v738_v32 = vld [vmem:[#allocation7 + $0xb0] ss:$8 sps:$4 sm:$0xff]  }
  0x54   :  { %v739_v33 = vld [vmem:[#allocation7 + $0xc4] ss:$8 sps:$4 sm:$0xff]   ;;  %v741_v34 = vld [vmem:[#allocation7 + $0xc0] ss:$8 sps:$4 sm:$0xff]   ;;  %v742_v35 = vld [vmem:[#allocation7 + $0xd4] ss:$8 sps:$4 sm:$0xff]  }
  0x55   :  { %v744_v36 = vld [vmem:[#allocation7 + $0xd0] ss:$8 sps:$4 sm:$0xff]   ;;  %v745_v37 = vld [vmem:[#allocation7 + $0xe4] ss:$8 sps:$4 sm:$0xff]   ;;  %v747_v38 = vld [vmem:[#allocation7 + $0xe0] ss:$8 sps:$4 sm:$0xff]  }
  0x56   :  { %378 = vmatpush1.bf16.msra.mxu1 %v711_v14  ;;  %v748_v39 = vld [vmem:[#allocation7 + $0xf4] ss:$8 sps:$4 sm:$0xff]   ;;  %v750_v40 = vld [vmem:[#allocation7 + $0xf0] ss:$8 sps:$4 sm:$0xff]   ;;  %v751_v41 = vld [vmem:[#allocation8 + $0x40] sm:$0xff]   ;;  %v89_v54 = vshrl.u32 %v88_v53, 7 }
  0x57   :  { %379 = vmatprep.subr.bf16.mxu1 %v712_v15  ;;  %v752_v42 = vld [vmem:[#allocation8] sm:$0xff]   ;;  %v753_v43 = vld [vmem:[#allocation8 + $0x48] sm:$0xff]   ;;  %666 = vmatprep.subr.bf16.mxu0 %v751_v41  ;;  %v755_v45 = vld [vmem:[#allocation8 + $0x50] sm:$0xff]  }
  0x58   :  { %667 = vmatpush3.bf16.msra.mxu0 %v752_v42  ;;  %v754_v44 = vld [vmem:[#allocation8 + $0x8] sm:$0xff]   ;;  %v756_v46 = vld [vmem:[#allocation8 + $0x10] sm:$0xff]   ;;  %v757_v47 = vld [vmem:[#allocation8 + $0x58] sm:$0xff]   ;;  %v90_v55 = vsub.s32 0, %v89_v54  ;;  %v94_v57 = vsub.s32 1, %v89_v54 }
  0x59   :  { %668 = vmatprep.subr.bf16.mxu0 %v753_v43  ;;  %v758_v48 = vld [vmem:[#allocation8 + $0x18] sm:$0xff]   ;;  %v759_v49 = vld [vmem:[#allocation8 + $0x60] sm:$0xff]   ;;  %v761_v51 = vld [vmem:[#allocation8 + $0x68] sm:$0xff]  }
  0x5a   :  { %380 = vmatpush1.bf16.msra.mxu1 %v714_v16  ;;  %v760_v50 = vld [vmem:[#allocation8 + $0x20] sm:$0xff]   ;;  %v762_v52 = vld [vmem:[#allocation8 + $0x28] sm:$0xff]   ;;  %v763_v6 = vld [vmem:[#allocation8 + $0x70] sm:$0xff]  }
  0x5b   :  { %381 = vmatprep.subr.bf16.mxu1 %v715_v17  ;;  %v86_v56 = vld [vmem:[%s1012_s2] sm:$0x3]  ;;  %v764_v7 = vld [vmem:[#allocation8 + $0x30] sm:$0xff]   ;;  %v765_v8 = vld [vmem:[#allocation8 + $0x78] sm:$0xff]  }
  0x5c   :  { %669 = vmatpush3.bf16.msra.mxu0 %v754_v44  ;;  %v91_v58 = vrot.slane %v86_v56, %v90_v55  ;;  %v95_v59 = vrot.slane %v86_v56, %v94_v57  ;;  %v766_v9 = vld [vmem:[#allocation8 + $0x38] sm:$0xff]   ;;  %v201_v10 = vld [vmem:[%s1014_s4] sm:$0x3]  ;;  %s894_s4 = smov [#allocation10]  }
  0x5d   :  { %670 = vmatprep.subr.bf16.mxu0 %v755_v45  ;;  %v206_v11 = vrot.slane %v201_v10, %v90_v55  ;;  %v210_v12 = vrot.slane %v201_v10, %v94_v57  ;;  %s600_s30 = sshll.u32 %s894_s4, 4  ;;  %s601_s30 = int_to_ptr.vmem [resolvable:$true] %s600_s30 }
  0x5e   :  { %382 = vmatpush1.bf16.msra.mxu1 %v717_v18  ;;  %s855_s8 = scalar_lea.vmem %s601_s30, 128  ;;  %p860_p5 = scmp.lt.s32.totalorder %s601_s30, %s601_s30 }
  0x5f   :  { %383 = vmatprep.subr.bf16.mxu1 %v718_v19  ;;  %p856_p4 = scmp.ne.s32.totalorder %s601_s30, %s855_s8  ;;  %p861_p6 = scmp.lt.s32.totalorder %s855_s8, %s855_s8 }
  0x60   :  { %671 = vmatpush3.bf16.msra.mxu0 %v756_v46 }
  0x61   :  { %672 = vmatprep.subr.bf16.mxu0 %v757_v47  ;;  %p862_p7 = por %p861_p6, %p860_p5 }
  0x62   :  { %384 = vmatpush1.bf16.msra.mxu1 %v720_v20 }
  0x63   :  { %385 = vmatprep.subr.bf16.mxu1 %v721_v21  ;;  %p863_p8 = pnand %p862_p7, %p856_p4 }
  0x64   :  { %673 = vmatpush3.bf16.msra.mxu0 %v758_v48 }
  0x65   :  { %674 = vmatprep.subr.bf16.mxu0 %v759_v49 }
  0x66   :  { %386 = vmatpush1.bf16.msra.mxu1 %v723_v22 }
  0x67   :  { %387 = vmatprep.subr.bf16.mxu1 %v724_v23 }
  0x68   :  { %675 = vmatpush3.bf16.msra.mxu0 %v760_v50 }
  0x69   :  { %676 = vmatprep.subr.bf16.mxu0 %v761_v51 }
  0x6a   :  { %388 = vmatpush1.bf16.msra.mxu1 %v726_v24  ;;  %v649_v24 = vld [vmem:[%s1016_s6] ss:$0 sm:$0xff] }
  0x6b   :  { %389 = vmatprep.subr.bf16.mxu1 %v727_v25 }
  0x6c   :  { %677 = vmatpush3.bf16.msra.mxu0 %v762_v52 }
  0x6d   :  { %678 = vmatprep.subr.bf16.mxu0 %v763_v6 }
  0x6e   :  { %390 = vmatpush1.bf16.msra.mxu1 %v729_v26 }
  0x6f   :  { %391 = vmatprep.subr.bf16.mxu1 %v730_v27 }
  0x70   :  { %679 = vmatpush3.bf16.msra.mxu0 %v764_v7 }
  0x71   :  { %680 = vmatprep.subr.bf16.mxu0 %v765_v8 }
  0x72   :  { %392 = vmatpush1.bf16.msra.mxu1 %v732_v28 }
  0x73   :  { %393 = vmatprep.subr.bf16.mxu1 %v733_v29 }
  0x74   :  { %681 = vmatpush3.bf16.msra.mxu0 %v766_v9 }
  0x76   :  { %394 = vmatpush1.bf16.msra.mxu1 %v735_v30 }
  0x77   :  { %395 = vmatprep.subr.bf16.mxu1 %v736_v31 }
  0x7a   :  { %396 = vmatpush1.bf16.msra.mxu1 %v738_v32 }
  0x7b   :  { %397 = vmatprep.subr.bf16.mxu1 %v739_v33 }
  0x7e   :  { %398 = vmatpush1.bf16.msra.mxu1 %v741_v34 }
  0x7f   :  { %399 = vmatprep.subr.bf16.mxu1 %v742_v35 }
  0x82   :  { %400 = vmatpush1.bf16.msra.mxu1 %v744_v36 }
  0x83   :  { %401 = vmatprep.subr.bf16.mxu1 %v745_v37 }
  0x86   :  { %402 = vmatpush1.bf16.msra.mxu1 %v747_v38 }
  0x87   :  { %403 = vmatprep.subr.bf16.mxu1 %v748_v39 }
  0x8a   :  { %404 = vmatpush1.bf16.msra.mxu1 %v750_v40 }
 0x126   :  { %v158_v60 = vpop.f32.mrb[0].mxu0 }
 0x127   :  { %v159_v61 = vadd.f32 %v158_v60, %v91_v58  ;;  %v160_v62 = vpop.f32.mrb[1].mxu0 }
 0x128   :  { %v161_v63 = vadd.f32 %v160_v62, %v95_v59  ;;  %v162_v0 = vpop.f32.mrb[2].mxu0 }
 0x129   :  { %v165_v1 = vmax.f32 %v159_v61, 0.0  ;;  %v163_v2 = vpop.f32.mrb[3].mxu0 }
 0x12a   :  { %v166_v3 = vmax.f32 %v161_v63, 0.0 }
 0x12b   :  { %v167_v5 = vpack.c.bf16 %v165_v1, %v165_v1 }
 0x12c   :  { %v168_v4 = vpack.c.bf16 %v166_v3, %v166_v3 }
 0x12e   :  { %405 = vmatprep.mubr.bf16.mxu1 %v168_v4 }
 0x12f   :  { %406 = vmatmul.mubr.bf16.vlgmr.msra.gmra.mrb[0].mxu1 %v167_v5 }
 0x202   :  { %v407_v13 = vpop.f32.mrb[0].mxu1 }
 0x203   :  { %v408_v14 = vadd.f32 %v407_v13, %v206_v11  ;;  %v409_v15 = vpop.f32.mrb[1].mxu1 }
 0x204   :  { %v410_v16 = vadd.f32 %v409_v15, %v210_v12  ;;  %v411_v17 = vpop.f32.mrb[2].mxu1 }
 0x205   :  { %v414_v18 = vmax.f32 %v408_v14, 0.0  ;;  %v412_v19 = vpop.f32.mrb[3].mxu1 }
 0x206   :  { %v415_v20 = vmax.f32 %v410_v16, 0.0 }
 0x207   :  { %v416_v22 = vpack.c.bf16 %v414_v18, %v414_v18 }
 0x208   :  { %v417_v21 = vpack.c.bf16 %v415_v20, %v415_v20 }
 0x20a   :  { %585 = vmatprep.mubr.bf16.mxu0 %v417_v21 }
 0x20b   :  { %586 = vmatmul.mubr.bf16.vlgmr.msra.gmra.mrb[4].mxu0 %v416_v22 }
 0x2de   :  { %v682_v23 = vpop.f32.mrb[4].mxu0 }
 0x2df   :  { %v683_v25 = vpop.f32.mrb[5].mxu0 }
 0x2e0   :  { %v684_v26 = vadd.f32 %v683_v25, %v682_v23  ;;  %v685_v27 = vpop.f32.mrb[6].mxu0 }
 0x2e1   :  { %v686_v28 = vpop.f32.mrb[7].mxu0 }
 0x2e2   :  { %v588_v29 = vadd.f32 %v684_v26, %v649_v24 }
 0x2e4   :  { %593 = vst [vmem:[#allocation10] sm:$0xff] %v588_v29 }
 0x2e5   :  { %866 = shalt.err (!%p863_p8)
}
 0x2e6   :  { %s867_s6 = scalar_lea.hbm %s1017_s7, 128 }
 0x2e7   :  { %p868_p9 = scmp.ne.s32.totalorder %s1017_s7, %s867_s6  ;;  %p871_p10 = scmp.lt.u32.totalorder %s867_s6, %s1017_s7 }
 0x2e9   :  { %p873_p11 = pnand %p871_p10, %p868_p9 }
 0x2eb   :  { %876 = shalt.err (!%p873_p11)
}
 0x2ec   :  { %603 = dma.vmem_to_hbm [thread:$0]  %s601_s30, 128, %s1017_s7, [#allocation4]  }
 0x2ed   :  { %883 = dma.done.wait [#allocation4], 128  }
 0x2ee   :  { %884 = vsyncadd [#allocation4], 4294967168 }
 0x2ef   :  { %607 = vsyncpa [#allocation3], 1 }
 0x2f0   :  { %608 = vsyncpa [#allocation6], 1 }
 0x2f1   :  { %609 = vsyncpa [#allocation9], 1 }
 0x2f2   :  { %610 = vsyncpa [#allocation4], 1 }

</bundles_post_ra>
